<compile_context>
chip_gen: v7x
topology: tpu7x:2x2x1
jax: 0.10.0
libtpu: 0.0.40
codegen_flags: <defaults>
</compile_context>

<pallas_src>
import math
import functools

import jax
import jax.numpy as jnp
from jax import lax
from jax.experimental import pallas as pl
from jax.experimental.pallas import tpu as pltpu

# ----------------------------- hyper-params ---------------------------------
EMB_SIZE   = 32                 # final multimodal embedding dim
HALF_EMB   = EMB_SIZE // 2      # each modality contributes half
NUM_LABELS = 8
VOCAB      = 64                 # synthetic nlp vocab
HIDDEN     = 32                 # synthetic nlp token-embedding dim

ARC_S  = 32.0
ARC_M  = 0.5
COS_M  = math.cos(ARC_M)
SIN_M  = math.sin(ARC_M)
TH     = math.cos(math.pi - ARC_M)
MM     = math.sin(math.pi - ARC_M) * ARC_M
EPS    = 1e-12                  # F.normalize eps
EPS_SQ = EPS * EPS              # clamp on sum-of-squares for rsqrt


# ----------------------------- fused kernel ----------------------------------
def fused_forward_kernel(img_ref, ids_ref, mask_ref, label_ref,
                         tok_table_ref, w_cv_ref, w_nlp_ref, b_ref, w_arc_ref,
                         o_ref):
    """Single-invocation fused forward.
       img:[B,C,HW] f32   ids:[B,S] i32   mask:[B,S] f32   label:[B,1] i32
       tok_table:[V,D]    w_cv:[C,E] (cols >=E/2 zero)  w_nlp:[D,E] (cols <E/2 zero)
       b:[1,E]            w_arc:[L,E]     ->  logits:[B,L]."""
    B, C, HW = img_ref.shape
    S = ids_ref.shape[1]
    V, D = tok_table_ref.shape
    L, E = w_arc_ref.shape

    # ---- CV branch: global average pool over HxW --------------------------
    img = img_ref[...]                                           # [B, C, HW]
    cv_pooled = jnp.mean(img, axis=-1)                           # [B, C]

    # ---- NLP branch: gather-as-matmul + masked mean pool -------------------
    ids  = ids_ref[...]                                          # [B, S] int32
    mask = mask_ref[...]                                         # [B, S] f32
    iota_v = lax.broadcasted_iota(jnp.int32, (B, S, V), 2)
    onehot_tok = (iota_v == ids[:, :, None]).astype(jnp.float32)     # [B,S,V]
    counts = jnp.sum(onehot_tok * mask[:, :, None], axis=1)          # [B,V]
    pooled_sum = jnp.dot(counts, tok_table_ref[...],
                         preferred_element_type=jnp.float32)         # [B,D]
    denom = jnp.maximum(jnp.sum(mask, axis=1, keepdims=True), 1.0)   # [B,1]
    nlp_pooled = pooled_sum / denom                                  # masked mean

    # ---- combined projection -> concatenated embedding (padded weights) ----
    emb = (jnp.dot(cv_pooled, w_cv_ref[...], preferred_element_type=jnp.float32)
           + jnp.dot(nlp_pooled, w_nlp_ref[...], preferred_element_type=jnp.float32)
           + b_ref[...])                                         # [B, E]

    # ---- per-half L2 normalization (F.normalize on each modality half) -----
    col   = lax.broadcasted_iota(jnp.int32, (1, E), 1)
    is_cv = col < HALF_EMB                                        # [1, E] bool
    sq    = emb * emb
    cv_ss = jnp.sum(jnp.where(is_cv, sq, 0.0), axis=1, keepdims=True)   # [B,1]
    nl_ss = jnp.sum(jnp.where(is_cv, 0.0, sq), axis=1, keepdims=True)   # [B,1]
    inv   = jnp.where(is_cv,
                      lax.rsqrt(jnp.maximum(cv_ss, EPS_SQ)),
                      lax.rsqrt(jnp.maximum(nl_ss, EPS_SQ)))
    final_emb = emb * inv                                         # [B, E]

    # ---- ArcMarginProduct (easy_margin=False) ------------------------------
    x_ss = jnp.sum(final_emb * final_emb, axis=-1, keepdims=True)
    x_n  = final_emb * lax.rsqrt(jnp.maximum(x_ss, EPS_SQ))
    w    = w_arc_ref[...]                                         # [L, E]
    w_ss = jnp.sum(w * w, axis=-1, keepdims=True)
    w_n  = w * lax.rsqrt(jnp.maximum(w_ss, EPS_SQ))
    cosine = lax.dot_general(x_n, w_n,
                             dimension_numbers=(((1,), (1,)), ((), ())),
                             preferred_element_type=jnp.float32)  # [B, L]
    sine = jnp.sqrt(jnp.clip(1.0 - cosine * cosine, 0.0, 1.0))
    phi  = cosine * COS_M - sine * SIN_M
    phi  = jnp.where(cosine > TH, phi, cosine - MM)               # easy_margin=False

    label   = label_ref[...]                                      # [B, 1] int32
    one_hot = (lax.broadcasted_iota(jnp.int32, (B, L), 1) == label).astype(jnp.float32)
    o_ref[...] = (one_hot * phi + (1.0 - one_hot) * cosine) * ARC_S


# ----------------------------- full forward -----------------------------------
def multimodal_classifier_forward(params, img_input, query_input_ids,
                                  query_attention_mask, label):
    """img_input: NCHW f32 [B,C,H,W]; query_input_ids: int32 [B,S];
       query_attention_mask: f32 [B,S]; label: int32 [B].
       Returns ArcMargin logits [B, NUM_LABELS]."""
    B, C, H, W = img_input.shape
    img_flat = img_input.reshape(B, C, H * W)                     # glue reshape only
    ids      = query_input_ids.astype(jnp.int32)
    mask     = query_attention_mask.astype(jnp.float32)
    label2d  = label.astype(jnp.int32).reshape(B, 1)

    # One-time parameter layout prep (glue, folded by jit): zero-pad the two
    # projections so two in-kernel dots accumulate directly into the
    # concatenated [B, EMB_SIZE] embedding (no in-kernel concatenate).
    w_cv_pad  = jnp.pad(params["w_cv"],  ((0, 0), (0, HALF_EMB)))      # [C, EMB]
    w_nlp_pad = jnp.pad(params["w_nlp"], ((0, 0), (HALF_EMB, 0)))      # [HIDDEN, EMB]
    b_comb    = jnp.concatenate([params["b_cv"], params["b_nlp"]], axis=1)  # [1, EMB]

    vmem = functools.partial(pl.BlockSpec, memory_space=pltpu.MemorySpace.VMEM)
    return pl.pallas_call(
        fused_forward_kernel,
        out_shape=jax.ShapeDtypeStruct((B, NUM_LABELS), jnp.float32),
        in_specs=[vmem()] * 9,
        out_specs=vmem(),
    )(img_flat, ids, mask, label2d,
      params["tok_table"], w_cv_pad, w_nlp_pad, b_comb, params["w_arc"])


# ----------------------------- main --------------------------------------------
if __name__ == "__main__":
    key = jax.random.PRNGKey(0)
    k = iter(jax.random.split(key, 16))

    B, C, H, W, S = 2, 4, 16, 16, 8

    params = {
        "w_cv":      jax.random.normal(next(k), (C, HALF_EMB), jnp.float32) * 0.1,
        "b_cv":      jax.random.normal(next(k), (1, HALF_EMB), jnp.float32) * 0.01,
        "tok_table": jax.random.normal(next(k), (VOCAB, HIDDEN), jnp.float32) * 0.1,
        "w_nlp":     jax.random.normal(next(k), (HIDDEN, HALF_EMB), jnp.float32) * 0.1,
        "b_nlp":     jax.random.normal(next(k), (1, HALF_EMB), jnp.float32) * 0.01,
        "w_arc":     jax.random.normal(next(k), (NUM_LABELS, EMB_SIZE), jnp.float32) * 0.1,
    }

    img_input = jax.random.normal(next(k), (B, C, H, W), jnp.float32)          # NCHW
    query_input_ids = jax.random.randint(next(k), (B, S), 0, VOCAB, jnp.int32)
    query_attention_mask = jnp.concatenate(
        [jnp.ones((B, S - 2), jnp.float32), jnp.zeros((B, 2), jnp.float32)], axis=1)
    label = jax.random.randint(next(k), (B,), 0, NUM_LABELS, jnp.int32)

    logits = jax.jit(multimodal_classifier_forward)(
        params, img_input, query_input_ids, query_attention_mask, label)
    jax.block_until_ready(logits)

    assert logits.shape == (B, NUM_LABELS) and logits.dtype == jnp.float32
    assert bool(jnp.all(jnp.isfinite(logits)))
    print("KERNEL_OK")
</pallas_src>

<mosaic_0001>
module attributes {stable_mosaic.version = 11 : i64} {
  func.func @fused_forward_kernel(%arg0: memref<2x4x256xf32, #tpu.memory_space<vmem>>, %arg1: memref<2x8xi32, #tpu.memory_space<vmem>>, %arg2: memref<2x8xf32, #tpu.memory_space<vmem>>, %arg3: memref<2x1xi32, #tpu.memory_space<vmem>>, %arg4: memref<64x32xf32, #tpu.memory_space<vmem>>, %arg5: memref<4x32xf32, #tpu.memory_space<vmem>>, %arg6: memref<32x32xf32, #tpu.memory_space<vmem>>, %arg7: memref<1x32xf32, #tpu.memory_space<vmem>>, %arg8: memref<8x32xf32, #tpu.memory_space<vmem>>, %arg9: memref<2x8xf32, #tpu.memory_space<vmem>>) attributes {dimension_semantics = [], scalar_prefetch = 0 : i64, scratch_operands = 0 : i64, tpu.core_type = #tpu.core_type<tc>} {
    %c0 = arith.constant 0 : index
    %c0_0 = arith.constant 0 : index
    %c0_1 = arith.constant 0 : index
    %0 = vector.load %arg0[%c0, %c0_0, %c0_1] : memref<2x4x256xf32, #tpu.memory_space<vmem>>, vector<2x4x256xf32>
    %cst = arith.constant dense<0.000000e+00> : vector<2x4xf32>
    %1 = vector.multi_reduction <add>, %0, %cst [2] : vector<2x4x256xf32> to vector<2x4xf32>
    %cst_2 = arith.constant 2.560000e+02 : f32
    %2 = vector.broadcast %cst_2 : f32 to vector<2x4xf32>
    %3 = arith.divf %1, %2 : vector<2x4xf32>
    %c0_3 = arith.constant 0 : index
    %c0_4 = arith.constant 0 : index
    %4 = vector.load %arg1[%c0_3, %c0_4] : memref<2x8xi32, #tpu.memory_space<vmem>>, vector<2x8xi32>
    %c0_5 = arith.constant 0 : index
    %c0_6 = arith.constant 0 : index
    %5 = vector.load %arg2[%c0_5, %c0_6] : memref<2x8xf32, #tpu.memory_space<vmem>>, vector<2x8xf32>
    %6 = tpu.iota {dimensions = array<i32: 2>} : vector<2x8x64xi32>
    %7 = vector.shape_cast %4 : vector<2x8xi32> to vector<2x8x1xi32>
    %8 = vector.broadcast %7 : vector<2x8x1xi32> to vector<2x8x64xi32>
    %9 = arith.cmpi eq, %6, %8 : vector<2x8x64xi32>
    %10 = arith.extui %9 : vector<2x8x64xi1> to vector<2x8x64xi32>
    %11 = arith.sitofp %10 : vector<2x8x64xi32> to vector<2x8x64xf32>
    %12 = vector.shape_cast %5 : vector<2x8xf32> to vector<2x8x1xf32>
    %13 = vector.broadcast %12 : vector<2x8x1xf32> to vector<2x8x64xf32>
    %14 = arith.mulf %11, %13 : vector<2x8x64xf32>
    %cst_7 = arith.constant dense<0.000000e+00> : vector<2x64xf32>
    %15 = vector.multi_reduction <add>, %14, %cst_7 [1] : vector<2x8x64xf32> to vector<2x64xf32>
    %c0_8 = arith.constant 0 : index
    %c0_9 = arith.constant 0 : index
    %16 = vector.load %arg4[%c0_8, %c0_9] : memref<64x32xf32, #tpu.memory_space<vmem>>, vector<64x32xf32>
    %cst_10 = arith.constant dense<0.000000e+00> : vector<2x32xf32>
    %17 = tpu.matmul %15, %16, %cst_10 {dimension_numbers = #tpu.dot_dimension_numbers<[1], [0], [0], [1], [0, 0, 1, 1], [], []>} : vector<2x64xf32>, vector<64x32xf32>, vector<2x32xf32> -> vector<2x32xf32>
    %cst_11 = arith.constant dense<0.000000e+00> : vector<2xf32>
    %18 = vector.multi_reduction <add>, %5, %cst_11 [1] : vector<2x8xf32> to vector<2xf32>
    %19 = vector.shape_cast %18 : vector<2xf32> to vector<2x1xf32>
    %cst_12 = arith.constant 1.000000e+00 : f32
    %20 = vector.broadcast %cst_12 : f32 to vector<2x1xf32>
    %21 = arith.maximumf %19, %20 : vector<2x1xf32>
    %22 = vector.broadcast %21 : vector<2x1xf32> to vector<2x32xf32>
    %23 = arith.divf %17, %22 : vector<2x32xf32>
    %c0_13 = arith.constant 0 : index
    %c0_14 = arith.constant 0 : index
    %24 = vector.load %arg5[%c0_13, %c0_14] : memref<4x32xf32, #tpu.memory_space<vmem>>, vector<4x32xf32>
    %cst_15 = arith.constant dense<0.000000e+00> : vector<2x32xf32>
    %25 = tpu.matmul %3, %24, %cst_15 {dimension_numbers = #tpu.dot_dimension_numbers<[1], [0], [0], [1], [0, 0, 1, 1], [], []>} : vector<2x4xf32>, vector<4x32xf32>, vector<2x32xf32> -> vector<2x32xf32>
    %c0_16 = arith.constant 0 : index
    %c0_17 = arith.constant 0 : index
    %26 = vector.load %arg6[%c0_16, %c0_17] : memref<32x32xf32, #tpu.memory_space<vmem>>, vector<32x32xf32>
    %cst_18 = arith.constant dense<0.000000e+00> : vector<2x32xf32>
    %27 = tpu.matmul %23, %26, %cst_18 {dimension_numbers = #tpu.dot_dimension_numbers<[1], [0], [0], [1], [0, 0, 1, 1], [], []>} : vector<2x32xf32>, vector<32x32xf32>, vector<2x32xf32> -> vector<2x32xf32>
    %28 = arith.addf %25, %27 : vector<2x32xf32>
    %c0_19 = arith.constant 0 : index
    %c0_20 = arith.constant 0 : index
    %29 = vector.load %arg7[%c0_19, %c0_20] : memref<1x32xf32, #tpu.memory_space<vmem>>, vector<1x32xf32>
    %30 = vector.broadcast %29 : vector<1x32xf32> to vector<2x32xf32>
    %31 = arith.addf %28, %30 : vector<2x32xf32>
    %32 = tpu.iota {dimensions = array<i32: 1>} : vector<1x32xi32>
    %c16_i32 = arith.constant 16 : i32
    %33 = vector.broadcast %c16_i32 : i32 to vector<1x32xi32>
    %34 = arith.cmpi slt, %32, %33 : vector<1x32xi32>
    %35 = arith.mulf %31, %31 : vector<2x32xf32>
    %cst_21 = arith.constant 0.000000e+00 : f32
    %36 = vector.shape_cast %34 : vector<1x32xi1> to vector<1x32xi1>
    %37 = vector.broadcast %36 : vector<1x32xi1> to vector<2x32xi1>
    %38 = vector.broadcast %cst_21 : f32 to vector<2x32xf32>
    %39 = arith.select %37, %35, %38 : vector<2x32xi1>, vector<2x32xf32>
    %cst_22 = arith.constant dense<0.000000e+00> : vector<2xf32>
    %40 = vector.multi_reduction <add>, %39, %cst_22 [1] : vector<2x32xf32> to vector<2xf32>
    %41 = vector.shape_cast %40 : vector<2xf32> to vector<2x1xf32>
    %cst_23 = arith.constant 0.000000e+00 : f32
    %42 = vector.shape_cast %34 : vector<1x32xi1> to vector<1x32xi1>
    %43 = vector.broadcast %42 : vector<1x32xi1> to vector<2x32xi1>
    %44 = vector.broadcast %cst_23 : f32 to vector<2x32xf32>
    %45 = arith.select %43, %44, %35 : vector<2x32xi1>, vector<2x32xf32>
    %cst_24 = arith.constant dense<0.000000e+00> : vector<2xf32>
    %46 = vector.multi_reduction <add>, %45, %cst_24 [1] : vector<2x32xf32> to vector<2xf32>
    %47 = vector.shape_cast %46 : vector<2xf32> to vector<2x1xf32>
    %cst_25 = arith.constant 1.000000e-24 : f32
    %48 = vector.broadcast %cst_25 : f32 to vector<2x1xf32>
    %49 = arith.maximumf %41, %48 : vector<2x1xf32>
    %50 = math.rsqrt %49 : vector<2x1xf32>
    %cst_26 = arith.constant 1.000000e-24 : f32
    %51 = vector.broadcast %cst_26 : f32 to vector<2x1xf32>
    %52 = arith.maximumf %47, %51 : vector<2x1xf32>
    %53 = math.rsqrt %52 : vector<2x1xf32>
    %54 = vector.shape_cast %34 : vector<1x32xi1> to vector<1x32xi1>
    %55 = vector.broadcast %54 : vector<1x32xi1> to vector<2x32xi1>
    %56 = vector.shape_cast %50 : vector<2x1xf32> to vector<2x1xf32>
    %57 = vector.broadcast %56 : vector<2x1xf32> to vector<2x32xf32>
    %58 = vector.shape_cast %53 : vector<2x1xf32> to vector<2x1xf32>
    %59 = vector.broadcast %58 : vector<2x1xf32> to vector<2x32xf32>
    %60 = arith.select %55, %57, %59 : vector<2x32xi1>, vector<2x32xf32>
    %61 = arith.mulf %31, %60 : vector<2x32xf32>
    %62 = arith.mulf %61, %61 : vector<2x32xf32>
    %cst_27 = arith.constant dense<0.000000e+00> : vector<2xf32>
    %63 = vector.multi_reduction <add>, %62, %cst_27 [1] : vector<2x32xf32> to vector<2xf32>
    %64 = vector.shape_cast %63 : vector<2xf32> to vector<2x1xf32>
    %cst_28 = arith.constant 1.000000e-24 : f32
    %65 = vector.broadcast %cst_28 : f32 to vector<2x1xf32>
    %66 = arith.maximumf %64, %65 : vector<2x1xf32>
    %67 = math.rsqrt %66 : vector<2x1xf32>
    %68 = vector.broadcast %67 : vector<2x1xf32> to vector<2x32xf32>
    %69 = arith.mulf %61, %68 : vector<2x32xf32>
    %c0_29 = arith.constant 0 : index
    %c0_30 = arith.constant 0 : index
    %70 = vector.load %arg8[%c0_29, %c0_30] : memref<8x32xf32, #tpu.memory_space<vmem>>, vector<8x32xf32>
    %71 = arith.mulf %70, %70 : vector<8x32xf32>
    %cst_31 = arith.constant dense<0.000000e+00> : vector<8xf32>
    %72 = vector.multi_reduction <add>, %71, %cst_31 [1] : vector<8x32xf32> to vector<8xf32>
    %73 = vector.shape_cast %72 : vector<8xf32> to vector<8x1xf32>
    %cst_32 = arith.constant 1.000000e-24 : f32
    %74 = vector.broadcast %cst_32 : f32 to vector<8x1xf32>
    %75 = arith.maximumf %73, %74 : vector<8x1xf32>
    %76 = math.rsqrt %75 : vector<8x1xf32>
    %77 = vector.broadcast %76 : vector<8x1xf32> to vector<8x32xf32>
    %78 = arith.mulf %70, %77 : vector<8x32xf32>
    %cst_33 = arith.constant dense<0.000000e+00> : vector<2x8xf32>
    %79 = tpu.matmul %69, %78, %cst_33 {dimension_numbers = #tpu.dot_dimension_numbers<[1], [1], [0], [0], [0, 0, 1, 0], [], []>} : vector<2x32xf32>, vector<8x32xf32>, vector<2x8xf32> -> vector<2x8xf32>
    %80 = arith.mulf %79, %79 : vector<2x8xf32>
    %cst_34 = arith.constant 1.000000e+00 : f32
    %81 = vector.broadcast %cst_34 : f32 to vector<2x8xf32>
    %82 = arith.subf %81, %80 : vector<2x8xf32>
    %cst_35 = arith.constant 0.000000e+00 : f32
    %cst_36 = arith.constant 1.000000e+00 : f32
    %83 = vector.broadcast %cst_35 : f32 to vector<2x8xf32>
    %84 = arith.maximumf %83, %82 : vector<2x8xf32>
    %85 = vector.broadcast %cst_36 : f32 to vector<2x8xf32>
    %86 = arith.minimumf %85, %84 : vector<2x8xf32>
    %87 = math.sqrt %86 : vector<2x8xf32>
    %cst_37 = arith.constant 0.87758255 : f32
    %88 = vector.broadcast %cst_37 : f32 to vector<2x8xf32>
    %89 = arith.mulf %79, %88 : vector<2x8xf32>
    %cst_38 = arith.constant 0.47942555 : f32
    %90 = vector.broadcast %cst_38 : f32 to vector<2x8xf32>
    %91 = arith.mulf %87, %90 : vector<2x8xf32>
    %92 = arith.subf %89, %91 : vector<2x8xf32>
    %cst_39 = arith.constant -0.87758255 : f32
    %93 = vector.broadcast %cst_39 : f32 to vector<2x8xf32>
    %94 = arith.cmpf ogt, %79, %93 : vector<2x8xf32>
    %cst_40 = arith.constant 0.239712775 : f32
    %95 = vector.broadcast %cst_40 : f32 to vector<2x8xf32>
    %96 = arith.subf %79, %95 : vector<2x8xf32>
    %97 = arith.select %94, %92, %96 : vector<2x8xi1>, vector<2x8xf32>
    %c0_41 = arith.constant 0 : index
    %c0_42 = arith.constant 0 : index
    %98 = vector.load %arg3[%c0_41, %c0_42] : memref<2x1xi32, #tpu.memory_space<vmem>>, vector<2x1xi32>
    %99 = tpu.iota {dimensions = array<i32: 1>} : vector<2x8xi32>
    %100 = vector.broadcast %98 : vector<2x1xi32> to vector<2x8xi32>
    %101 = arith.cmpi eq, %99, %100 : vector<2x8xi32>
    %102 = arith.extui %101 : vector<2x8xi1> to vector<2x8xi32>
    %103 = arith.sitofp %102 : vector<2x8xi32> to vector<2x8xf32>
    %104 = arith.mulf %103, %97 : vector<2x8xf32>
    %cst_43 = arith.constant 1.000000e+00 : f32
    %105 = vector.broadcast %cst_43 : f32 to vector<2x8xf32>
    %106 = arith.subf %105, %103 : vector<2x8xf32>
    %107 = arith.mulf %106, %79 : vector<2x8xf32>
    %108 = arith.addf %104, %107 : vector<2x8xf32>
    %cst_44 = arith.constant 3.200000e+01 : f32
    %109 = vector.broadcast %cst_44 : f32 to vector<2x8xf32>
    %110 = arith.mulf %108, %109 : vector<2x8xf32>
    %c0_45 = arith.constant 0 : index
    %c0_46 = arith.constant 0 : index
    %111 = vector.load %arg9[%c0_45, %c0_46] : memref<2x8xf32, #tpu.memory_space<vmem>>, vector<2x8xf32>
    tpu.vector_store %arg9[%c0_45, %c0_46], %110 {strides = array<i32>} : memref<2x8xf32, #tpu.memory_space<vmem>>, vector<2x8xf32>,
    return
  }
}

</mosaic_0001>

<bundles_post_ra>
// kernel: multimodal_classifier_forward.1
= control target key start
LH: loop header
LB: loop body
LE: loop exit
PB: predicated region body
PF: predicated region fallthrough
CT: control target
= control target key end

     0   :  { %v57_v0 = vlaneseq  ;;  %s839_s0 = inlined_call_operand.vmem [shape: f32[2,4,256], index: 0, kind: input, shape index: {}]   ;;  %s840_s1 = inlined_call_operand.vmem [shape: s32[2,8], index: 1, kind: input, shape index: {}]   ;;  %s841_s2 = inlined_call_operand.vmem [shape: f32[2,8], index: 2, kind: input, shape index: {}]   ;;  %s842_s3 = inlined_call_operand.vmem [shape: s32[2,1], index: 3, kind: input, shape index: {}]   ;;  %s843_s4 = inlined_call_operand.vmem [shape: f32[64,32], index: 4, kind: input, shape index: {}]   ;;  %s844_s5 = inlined_call_operand.vmem [shape: f32[4,32], index: 5, kind: input, shape index: {}]   ;;  %s845_s6 = inlined_call_operand.vmem [shape: f32[32,32], index: 6, kind: input, shape index: {}]   ;;  %s846_s7 = inlined_call_operand.vmem [shape: f32[1,32], index: 7, kind: input, shape index: {}]   ;;  %s847_s8 = inlined_call_operand.vmem [shape: f32[8,32], index: 8, kind: input, shape index: {}]   ;;  %s848_s9 = inlined_call_operand.hbm [shape: f32[2,8], index: 9, kind: output, shape index: {}]  }
   0x1   :  { %v110_v1 = vld [vmem:[%s843_s4] sm:$0xff]  ;;  %v111_v2 = vld [vmem:[%s843_s4 + $0x8] sm:$0xff] }
   0x2   :  { %14 = vsyncpa [#allocation3], 0  ;;  %v55_v3 = vld [vmem:[%s840_s1] sm:$0x3]  ;;  %v725_v4 = vshrl.u32 %v57_v0, 7  ;;  %v660_v5 = vmov 0.0|0.0   ;;  %v599_v6 = vpack.c.bf16 %v111_v2, %v110_v1 }
   0x3   :  { %598 = vmatprep.subr.bf16.mxu0 %v660_v5  ;;  %610 = vmatprep.subr.bf16.mxu1 %v660_v5  ;;  %v56_v7 = vld [vmem:[%s841_s2] sm:$0x3]  ;;  %v112_v8 = vld [vmem:[%s843_s4 + $0x10] sm:$0xff]  ;;  %v113_v9 = vld [vmem:[%s843_s4 + $0x18] sm:$0xff]  ;;  %vm661_vm0 = vmmov 0   ;;  %v662_v23 = vmov 0.0  }
   0x4   :  { %v61_v10 = vsub.s32 0, %v725_v4  ;;  %v68_v11 = vsub.s32 1, %v725_v4  ;;  %600 = vmatpush3.bf16.msra.mxu0 %v599_v6  ;;  %v602_v12 = vpack.c.bf16 %v113_v9, %v112_v8  ;;  %v114_v15 = vld [vmem:[%s843_s4 + $0x20] sm:$0xff]  ;;  %v115_v16 = vld [vmem:[%s843_s4 + $0x28] sm:$0xff]  ;;  %v116_v20 = vld [vmem:[%s843_s4 + $0x30] sm:$0xff]  ;;  %574 = vmatprep.mubr.msk.f32.mxu0 %vm661_vm0, %v662_v23  ;;  %vm194_vm1 = vcmask 58368  }
   0x5   :  { %601 = vmatprep.subr.bf16.mxu0 %v660_v5  ;;  %v605_v19 = vpack.c.bf16 %v115_v16, %v114_v15  ;;  %v117_v21 = vld [vmem:[%s843_s4 + $0x38] sm:$0xff]  ;;  %585 = vmatprep.mubr.msk.f32.mxu1 %vm661_vm0, %v662_v23  ;;  %v34_v24 = vld [vmem:[%s839_s0 + $0x8] sm:$0xff]  ;;  %v33_v25 = vld [vmem:[%s839_s0] sm:$0xff]  ;;  %vm41_vm2 = vcmask 1043456   ;;  %v195_v28 = vsel %vm194_vm1, %v56_v7, 0.0  ;;  %v779_v41 = vand.u32 127, %v57_v0 }
   0x6   :  { %v62_v13 = vrot.slane %v55_v3, %v61_v10  ;;  %v82_v14 = vrot.slane %v56_v7, %v61_v10  ;;  %v69_v17 = vrot.slane %v55_v3, %v68_v11  ;;  %v89_v18 = vrot.slane %v56_v7, %v68_v11  ;;  %v202_v35 = vld [vmem:[%s845_s6] sm:$0xff]  ;;  %v203_v36 = vld [vmem:[%s845_s6 + $0x8] sm:$0xff]  ;;  %v204_v37 = vld [vmem:[%s845_s6 + $0x10] sm:$0xff] }
   0x7   :  { %v608_v22 = vpack.c.bf16 %v117_v21, %v116_v20  ;;  %v38_v26 = vcombine.high %v34_v24, %v34_v24  ;;  %v37_v27 = vcombine.high %v33_v25, %v33_v25  ;;  %v47_v29 = vsel %vm41_vm2, %v34_v24, 0.0  ;;  %v205_v39 = vld [vmem:[%s845_s6 + $0x18] sm:$0xff]  ;;  %v201_v15 = vld [vmem:[%s844_s5] sm:$0xf] }
   0x8   :  { %64 = vbcast.lane.b32.xlu0 %v62_v13, 256  ;;  %84 = vbcast.lane.b32.xlu1 %v82_v14, 256  ;;  %v42_v31 = vsel %vm41_vm2, %v33_v25, 0.0  ;;  %v611_v38 = vpack.c.bf16 %v203_v36, %v202_v35  ;;  %v614_v40 = vpack.c.bf16 %v205_v39, %v204_v37  ;;  %vm95_vm4 = vcmask 523264  }
   0x9   :  { %603 = vmatpush3.bf16.msra.mxu0 %v602_v12  ;;  %v48_v30 = vsel %vm41_vm2, %v38_v26, 0.0  ;;  %v43_v32 = vsel %vm41_vm2, %v37_v27, 0.0  ;;  %vm120_vm6 = vcmask 1041409   ;;  %v284_v6 = vsub.s32 %v779_v41, %v725_v4 }
   0xa   :  { %604 = vmatprep.subr.bf16.mxu0 %v660_v5  ;;  %v49_v33 = vadd.f32 %v48_v30, %v47_v29  ;;  %v44_v34 = vadd.f32 %v43_v32, %v42_v31  ;;  %612 = vmatpush3.bf16.msra.mxu1 %v611_v38  ;;  %vm206_vm7 = vcmask 261120   ;;  %vm291_vm8 = vcmask 31744   ;;  %v401_v29 = vld [vmem:[%s847_s8] sm:$0xff] }
   0xb   :  { %613 = vmatprep.subr.bf16.mxu1 %v660_v5  ;;  %vm375_vm9 = vcmp.lt.s32.totalorder %v779_v41, 16  ;;  %vm380_vm10 = vcmask 254976   ;;  %v402_v30 = vmul.f32 %v401_v29, %v401_v29 }
   0xc   :  { %71 = vbcast.lane.b32.xlu0 %v69_v17, 256  ;;  %91 = vbcast.lane.b32.xlu1 %v89_v18, 256 }
   0xd   :  { %606 = vmatpush3.bf16.msra.mxu0 %v605_v19  ;;  %v535_v19 = vld [vmem:[%s846_s7] ss:$0 sm:$0xff]  ;;  %v403_v31 = vsel %vm206_vm7, %v402_v30, 0.0 }
   0xe   :  { %607 = vmatprep.subr.bf16.mxu0 %v660_v5  ;;  %615 = vmatpush3.bf16.msra.mxu1 %v614_v40 }
   0xf   :  { %588 = vmatprep.subr.mxu1 %v662_v23 }
  0x11   :  { %609 = vmatpush3.bf16.msra.mxu0 %v608_v22 }
  0x2b   :  { %196 = vadd.xlane.f32.xlu0 %v195_v28 }
  0x2f   :  { %50 = vadd.xlane.f32.xlu0 %v49_v33 }
  0x30   :  { %45 = vadd.xlane.f32.xlu1 %v44_v34 }
  0x7a   :  { %v65_v42 = vpop.permute.xlu0 %64  ;;  %v85_v43 = vpop.permute.xlu1 %84 }
  0x7b   :  { %vm73_vm3 = vcmp.eq.s32.totalorder %v779_v41, %v65_v42 }
  0x7c   :  { %v529_v44 = vsel %vm73_vm3, 1.0, %v662_v23 }
  0x7d   :  { %v93_v45 = vmul.f32 %v529_v44, %v85_v43 }
  0x7e   :  { %v72_v46 = vpop.permute.xlu0 %71  ;;  %v92_v47 = vpop.permute.xlu1 %91 }
  0x7f   :  { %v96_v48 = vsel %vm95_vm4, %v93_v45, 0.0  ;;  %vm74_vm5 = vcmp.eq.s32.totalorder %v779_v41, %v72_v46 }
  0x80   :  { %v97_v49 = vrot.slane %v96_v48, 4  ;;  %v530_v50 = vsel %vm74_vm5, 1.0, %v662_v23 }
  0x81   :  { %v94_v51 = vmul.f32 %v530_v50, %v92_v47  ;;  %v502_v47 = vld [vmem:[%s842_s3] sm:$0x3]  ;;  %s664_s3 = smov [#allocation2]  }
  0x82   :  { %v98_v52 = vadd.f32 %v97_v49, %v96_v48  ;;  %v663_v48 = vmov 0   ;;  %s521_s20 = sshll.u32 %s664_s3, 4  ;;  %s522_s20 = int_to_ptr.vmem [resolvable:$true] %s521_s20 }
  0x83   :  { %v103_v53 = vsel %vm95_vm4, %v94_v51, 0.0  ;;  %621 = vset.pattern.permute.xlu0 %v663_v48  ;;  %s636_s1 = scalar_lea.vmem %s522_s20, 32  ;;  %p641_p1 = scmp.lt.s32.totalorder %s522_s20, %s522_s20 }
  0x84   :  { %v99_v54 = vrot.slane %v98_v52, 2  ;;  %v104_v55 = vrot.slane %v103_v53, 4  ;;  %p637_p0 = scmp.ne.s32.totalorder %s522_s20, %s636_s1  ;;  %p642_p2 = scmp.lt.s32.totalorder %s636_s1, %s636_s1 }
  0x86   :  { %v100_v56 = vadd.f32 %v99_v54, %v98_v52  ;;  %v105_v57 = vadd.f32 %v104_v55, %v103_v53  ;;  %p643_p3 = por %p642_p2, %p641_p1 }
  0x88   :  { %v106_v58 = vrot.slane %v105_v57, 2  ;;  %v101_v59 = vrot.slane %v100_v56, 1  ;;  %p644_p4 = pnand %p643_p3, %p637_p0 }
  0x8a   :  { %v107_v60 = vadd.f32 %v106_v58, %v105_v57  ;;  %v102_v62 = vadd.f32 %v101_v59, %v100_v56 }
  0x8c   :  { %v108_v61 = vrot.slane %v107_v60, 1 }
  0x8e   :  { %v109_v63 = vadd.f32 %v108_v61, %v107_v60 }
  0x90   :  { %v121_v0 = vsel %vm120_vm6, %v109_v63, %v102_v62 }
  0x91   :  { %575 = vmatmul.mubr.msk.f32.vlgmr.msra.gmra.mrb[0].mxu0 %vm95_vm4, %v121_v0 }
  0xb8   :  { %v197_v1 = vpop.xlane.xlu0 %196 }
  0xb9   :  { %v198_v2 = vmax.f32 %v197_v1, 1.0 }
  0xbb   :  { %624 = vrcp.f32 %v198_v2 }
  0xbc   :  { %v51_v3 = vpop.xlane.xlu0 %50 }
  0xbd   :  { %v46_v5 = vpop.xlane.xlu1 %45  ;;  %v54_v7 = vmul.f32 0.00390625, %v51_v3 }
  0xbe   :  { %v53_v8 = vmul.f32 0.00390625, %v46_v5 }
  0xbf   :  { %v289_v11 = vrot.slane %v54_v7, %v284_v6 }
  0xc0   :  { %v285_v12 = vrot.slane %v53_v8, %v284_v6 }
  0xc2   :  { %v290_v4 = vsel %vm120_vm6, %v289_v11, %v285_v12 }
  0xc5   :  { %v625_v9 = vpop.eup %624 }
 0x164   :  { %v190_v10 = vpop.f32.mrb[0].mxu0 }
 0x165   :  { %v200_v13 = vmul.f32 %v625_v9, %v190_v10  ;;  %v576_v14 = vpop.f32.mrb[1].mxu0 }
 0x167   :  { %586 = vmatmul.mubr.msk.f32.vlgmr.msra.gmra.mrb[0].mxu1 %vm206_vm7, %v200_v13 }
 0x168   :  { %589 = vmatpush3.msk.msra.mxu1 %vm41_vm2, %v201_v15  ;;  %590 = vmatprep.mubr.msk.f32.mxu1 %vm661_vm0, %v662_v23 }
 0x169   :  { %593 = vmatprep.subr.mxu1 %v662_v23 }
 0x16b   :  { %591 = vmatmul.mubr.msk.f32.vlgmr.msra.gmra.mrb[2].mxu1 %vm291_vm8, %v290_v4 }
 0x16c   :  { %595 = vmatprep.mubr.msk.f32.mxu1 %vm661_vm0, %v662_v23 }
 0x23a   :  { %v276_v16 = vpop.f32.mrb[0].mxu1 }
 0x23b   :  { %v587_v17 = vpop.f32.mrb[1].mxu1 }
 0x23e   :  { %v363_v18 = vpop.f32.mrb[2].mxu1 }
 0x23f   :  { %v364_v20 = vadd.f32 %v363_v18, %v276_v16  ;;  %v592_v21 = vpop.f32.mrb[3].mxu1 }
 0x241   :  { %v374_v22 = vadd.f32 %v535_v19, %v364_v20 }
 0x243   :  { %v376_v24 = vmul.f32 %v374_v22, %v374_v22 }
 0x245   :  { %v384_v25 = vsel %vm375_vm9, 0.0, %v376_v24  ;;  %v379_v26 = vsel %vm375_vm9, %v376_v24, 0.0 }
 0x246   :  { %v385_v27 = vsel %vm380_vm10, %v384_v25, 0.0  ;;  %v381_v28 = vsel %vm380_vm10, %v379_v26, 0.0 }
 0x247   :  { %386 = vadd.xlane.f32.xlu1 %v385_v27  ;;  %382 = vadd.xlane.f32.xlu0 %v381_v28 }
 0x24b   :  { %404 = vadd.xlane.f32.xlu0 %v403_v31 }
 0x261   :  { %504 = vperm.xlu0 %621, %v502_v47  }
 0x2d4   :  { %v387_v32 = vpop.xlane.xlu1 %386  ;;  %v383_v33 = vpop.xlane.xlu0 %382 }
 0x2d5   :  { %v390_v34 = vmax.f32 %v387_v32, 1e-24  ;;  %v388_v35 = vmax.f32 %v383_v33, 1e-24 }
 0x2d7   :  { %626 = vrsqrt.f32 %v390_v34 }
 0x2d8   :  { %628 = vrsqrt.f32 %v388_v35  ;;  %v405_v43 = vpop.xlane.xlu0 %404 }
 0x2d9   :  { %v406_v44 = vmax.f32 %v405_v43, 1e-24 }
 0x2db   :  { %630 = vrsqrt.f32 %v406_v44 }
 0x2e0   :  { %v505_v59 = vpop.permute.xlu0 %504 }
 0x2e1   :  { %v627_v36 = vpop.eup %626  ;;  %vm506_vm11 = vcmp.eq.s32.totalorder %v779_v41, %v505_v59 }
 0x2e2   :  { %v629_v37 = vpop.eup %628  ;;  %v539_v63 = vsel %vm506_vm11, 1.0, %v662_v23 }
 0x2e3   :  { %v392_v38 = vsel %vm375_vm9, %v629_v37, %v627_v36  ;;  %v510_v5 = vsub.f32 1.0, %v539_v63 }
 0x2e4   :  { %v393_v39 = vmul.f32 %v392_v38, %v374_v22 }
 0x2e5   :  { %v631_v45 = vpop.eup %630 }
 0x2e6   :  { %v394_v40 = vmul.f32 %v393_v39, %v393_v39  ;;  %v408_v46 = vmul.f32 %v631_v45, %v401_v29 }
 0x2e8   :  { %v395_v42 = vsel %vm380_vm10, %v394_v40, 0.0  ;;  %594 = vmatpush3.xpose.msk.msra.mxu1 %vm206_vm7, %v408_v46 }
 0x2e9   :  { %396 = vadd.xlane.f32.xlu1 %v395_v42 }
 0x376   :  { %v397_v49 = vpop.xlane.xlu1 %396 }
 0x377   :  { %v398_v50 = vmax.f32 %v397_v49, 1e-24 }
 0x379   :  { %632 = vrsqrt.f32 %v398_v50 }
 0x383   :  { %v633_v51 = vpop.eup %632 }
 0x384   :  { %v400_v52 = vmul.f32 %v633_v51, %v393_v39 }
 0x386   :  { %596 = vmatmul.mubr.msk.f32.vlgmr.msra.gmra.mrb[4].mxu1 %vm206_vm7, %v400_v52 }
 0x459   :  { %v481_v53 = vpop.f32.mrb[4].mxu1 }
 0x45a   :  { %v485_v54 = vmul.f32 %v481_v53, %v481_v53  ;;  %v597_v55 = vpop.f32.mrb[5].mxu1  ;;  %v496_v2 = vmul.f32 0.87758255, %v481_v53  ;;  %v538_v7 = vadd.f32 -0.23971277, %v481_v53  ;;  %v511_v10 = vmul.f32 %v510_v5, %v481_v53 }
 0x45b   :  { %vm499_vm14 = vcmp.gt.f32.partialorder %v481_v53, -0.87758255 }
 0x45c   :  { %v486_v56 = vsub.f32 1.0, %v485_v54 }
 0x45e   :  { %v487_v57 = vmax.f32 %v486_v56, 0.0 }
 0x460   :  { %v488_v58 = vmin.f32 %v487_v57, 1.0 }
 0x462   :  { %634 = vrsqrt.f32 %v488_v58  ;;  %vm491_vm12 = vcmp.eq.f32.partialorder %v488_v58, inf  ;;  %v494_v62 = vand.u32 2147483648, %v488_v58  ;;  %vm493_vm13 = vcmp.eq.f32.partialorder %v488_v58, 0.0 }
 0x46c   :  { %v635_v60 = vpop.eup %634 }
 0x46d   :  { %v490_v61 = vmul.f32 %v635_v60, %v488_v58 }
 0x46f   :  { %v492_v0 = vsel %vm491_vm12, %v488_v58, %v490_v61 }
 0x470   :  { %v495_v1 = vsel %vm493_vm13, %v494_v62, %v492_v0 }
 0x471   :  { %v497_v3 = vmul.f32 0.47942555, %v495_v1 }
 0x473   :  { %v498_v6 = vsub.f32 %v496_v2, %v497_v3 }
 0x475   :  { %v501_v8 = vsel %vm499_vm14, %v498_v6, %v538_v7 }
 0x476   :  { %v509_v9 = vmul.f32 %v539_v63, %v501_v8 }
 0x478   :  { %v512_v41 = vadd.f32 %v511_v10, %v509_v9 }
 0x47a   :  { %v513_v11 = vmul.f32 32.0, %v512_v41 }
 0x47c   :  { %514 = vst.msk [vmem:[#allocation2] sm:$0x3] %vm194_vm1, %v513_v11 }
 0x47d   :  { %647 = shalt.err (!%p644_p4)
}
 0x47e   :  { %s648_s22 = scalar_lea.hbm %s848_s9, 32 }
 0x47f   :  { %p649_p5 = scmp.ne.s32.totalorder %s848_s9, %s648_s22  ;;  %p652_p6 = scmp.lt.u32.totalorder %s648_s22, %s848_s9 }
 0x481   :  { %p654_p7 = pnand %p652_p6, %p649_p5 }
 0x483   :  { %657 = shalt.err (!%p654_p7)
}
 0x484   :  { %524 = dma.vmem_to_hbm [thread:$0]  %s522_s20, 32, %s848_s9, [#allocation3]  }
 0x485   :  { %658 = dma.done.wait [#allocation3], 32  }
 0x486   :  { %659 = vsyncadd [#allocation3], 4294967264 }
 0x487   :  { %528 = vsyncpa [#allocation3], 1 }

</bundles_post_ra>
